<compile_context>
chip_gen: v7x
topology: tpu7x:2x2x1
jax: 0.10.0
libtpu: 0.0.40
codegen_flags: <defaults>
</compile_context>

<pallas_src>
import jax
import jax.numpy as jnp
from jax.experimental import pallas as pl
from jax.experimental.pallas import tpu as pltpu


def _to_2tuple(v):
    return tuple(v) if isinstance(v, (tuple, list)) else (v, v)


def _round_up(a, m):
    return ((a + m - 1) // m) * m


def _patch_embed_kernel(p_ref, w_ref, b_ref, o_ref):
    # p_ref: (tm, K) patches; w_ref: (K, tn); b_ref: (1, tn) f32; o_ref: (tm, tn)
    acc = jnp.dot(p_ref[...], w_ref[...], preferred_element_type=jnp.float32)
    o_ref[...] = (acc + b_ref[...]).astype(o_ref.dtype)


def patch_embed_pallas(x, weight, bias, patch_size, *, compute_dtype=None):
    """PatchEmbed forward: Conv2d(k=p, s=p) -> flatten(2) -> transpose(1, 2).

    x:      (B, C, H, W)
    weight: (E, C, ph, pw)   (PyTorch Conv2d layout)
    bias:   (E,)
    compute_dtype: optional dtype for the matmul operands (e.g. jnp.bfloat16
        on v5e when the accuracy budget allows); accumulation stays f32.
    returns (B, num_patches, E) in x.dtype
    """
    B, C, H, W = x.shape
    ph, pw = patch_size
    E = weight.shape[0]
    assert H % ph == 0 and W % pw == 0, "image must be divisible by patch size"
    nh, nw = H // ph, W // pw
    n_patches = nh * nw
    M = B * n_patches
    K = C * ph * pw

    out_dtype = x.dtype
    op_dtype = jnp.dtype(compute_dtype) if compute_dtype is not None else jnp.dtype(x.dtype)
    # TODO(synk): on v5e, pass compute_dtype=jnp.bfloat16 from the caller when
    # the accuracy budget allows; f32 MXU mode is several-fold slower there.

    # im2col: patch-feature ordering (c, kh, kw) matches weight.reshape(E, K).
    patches = x.reshape(B, C, nh, ph, nw, pw)
    patches = patches.transpose(0, 2, 4, 1, 3, 5).reshape(M, K)
    if patches.dtype != op_dtype:
        patches = patches.astype(op_dtype)
    w2d = weight.reshape(E, K).T.astype(op_dtype)      # (K, E): lane-dense output cols
    b2d = bias.reshape(1, E).astype(jnp.float32)

    itemsize = int(op_dtype.itemsize)

    # ---- row (patch) tile ---------------------------------------------------
    tm = min(512, _round_up(M, 8))
    # keep the double-buffered patches tile <= ~8 MiB so the default scoped
    # VMEM limit is never a concern (no vmem_limit override needed)
    vmem_rows = max(8, ((8 * 1024 * 1024) // max(1, 2 * K * itemsize)) // 8 * 8)
    tm = min(tm, vmem_rows)
    # give megacore (v7x: 2 TCs/chip) at least two row blocks when possible
    if M > 16:
        tm = min(tm, _round_up(pl.cdiv(M, 2), 8))
    tm = max(tm, 8)
    M_pad = _round_up(M, tm)
    if M_pad != M:
        patches = jnp.pad(patches, ((0, M_pad - M), (0, 0)))
    n_row_blocks = M_pad // tm

    # ---- embed (output-column) tile ------------------------------------------
    # Keep the whole (K, E) weight resident in VMEM (constant block index ->
    # DMAed exactly once) whenever it is small enough; otherwise tile E and put
    # the embed axis OUTERMOST so each weight tile is fetched only once.
    weight_bytes = K * E * itemsize
    if weight_bytes <= 8 * 1024 * 1024 or E % 128 != 0:
        tn = E
    elif E % 256 == 0:
        tn = 256
    else:
        tn = 128

    if tn == E:
        grid = (n_row_blocks,)
        in_specs = [
            pl.BlockSpec((tm, K), lambda i: (i, 0)),   # streaming patch rows
            pl.BlockSpec((K, E), lambda i: (0, 0)),    # resident weight (1 DMA)
            pl.BlockSpec((1, E), lambda i: (0, 0)),    # resident bias
        ]
        out_specs = pl.BlockSpec((tm, E), lambda i: (i, 0))
        dims = ("parallel",)
    else:
        grid = (E // tn, n_row_blocks)                 # embed axis outer (slow)
        in_specs = [
            pl.BlockSpec((tm, K), lambda j, i: (i, 0)),
            pl.BlockSpec((K, tn), lambda j, i: (0, j)),
            pl.BlockSpec((1, tn), lambda j, i: (0, j)),
        ]
        out_specs = pl.BlockSpec((tm, tn), lambda j, i: (i, j))
        dims = ("parallel", "parallel")

    cost = pl.CostEstimate(
        flops=2 * M * K * E,
        transcendentals=0,
        bytes_accessed=(M_pad * K * itemsize                 # patches (read once)
                        + K * E * itemsize                   # weight (resident)
                        + E * 4                              # bias (f32)
                        + M_pad * E * jnp.dtype(out_dtype).itemsize),  # output
    )

    out = pl.pallas_call(
        _patch_embed_kernel,
        out_shape=jax.ShapeDtypeStruct((M_pad, E), out_dtype),
        grid_spec=pltpu.PrefetchScalarGridSpec(
            num_scalar_prefetch=0,
            grid=grid,
            in_specs=in_specs,
            out_specs=out_specs,
        ),
        compiler_params=pltpu.CompilerParams(
            dimension_semantics=dims,
            # Let XLA fuse the im2col transpose/pad into the patches-input DMA
            # instead of materializing the (M, K) matrix in HBM first.
            allow_input_fusion=[True, False, False],
        ),
        cost_estimate=cost,
    )(patches, w2d, b2d)

    return out[:M].reshape(B, n_patches, E)


class PatchEmbed:
    """JAX/Pallas equivalent of the PyTorch PatchEmbed module."""

    def __init__(self, img_size=224, patch_size=16, in_chans=3, embed_dim=768,
                 *, key=None):
        img_size = _to_2tuple(img_size)
        patch_size = _to_2tuple(patch_size)
        self.img_size = img_size
        self.patch_size = patch_size
        self.num_patches = (img_size[1] // patch_size[1]) * (img_size[0] // patch_size[0])

        if key is None:
            key = jax.random.PRNGKey(0)
        kw, kb = jax.random.split(key)
        fan_in = in_chans * patch_size[0] * patch_size[1]
        bound = 1.0 / (fan_in ** 0.5)
        # Matches PyTorch Conv2d default uniform(-1/sqrt(fan_in), 1/sqrt(fan_in)).
        self.weight = jax.random.uniform(
            kw, (embed_dim, in_chans, patch_size[0], patch_size[1]),
            jnp.float32, -bound, bound)
        self.bias = jax.random.uniform(kb, (embed_dim,), jnp.float32, -bound, bound)

    def __call__(self, x, *, compute_dtype=None):
        B, C, H, W = x.shape
        assert H == self.img_size[0] and W == self.img_size[1], (
            f"Input image size ({H}*{W}) doesn't match model "
            f"({self.img_size[0]}*{self.img_size[1]}).")
        return patch_embed_pallas(x, self.weight, self.bias, self.patch_size,
                                  compute_dtype=compute_dtype)


def _patch_embed_ref(x, weight, bias, patch_size):
    """Pure-JAX reference using a real strided convolution."""
    out = jax.lax.conv_general_dilated(
        x.astype(jnp.float32), weight.astype(jnp.float32),
        window_strides=patch_size, padding="VALID",
        dimension_numbers=("NCHW", "OIHW", "NCHW"))
    out = out + bias.astype(jnp.float32).reshape(1, -1, 1, 1)
    B, E, hh, ww = out.shape
    return out.reshape(B, E, hh * ww).transpose(0, 2, 1).astype(x.dtype)


if __name__ == "__main__":
    key = jax.random.PRNGKey(0)
    kx, kp = jax.random.split(key)

    # Small shapes consistent with the module: B=2, C=3, 32x32 image,
    # 8x8 patches (16 patches), embed_dim=32.
    B, C, IMG, PATCH, EMBED = 2, 3, 32, 8, 32
    x = jax.random.normal(kx, (B, C, IMG, IMG), jnp.float32)

    mod = PatchEmbed(img_size=IMG, patch_size=PATCH, in_chans=C,
                     embed_dim=EMBED, key=kp)
    out = mod(x)
    jax.block_until_ready(out)

    ref = _patch_embed_ref(x, mod.weight, mod.bias, mod.patch_size)
    assert out.shape == (B, mod.num_patches, EMBED), out.shape
    assert jnp.allclose(out, ref, rtol=1e-4, atol=1e-4), (
        float(jnp.max(jnp.abs(out - ref))))
    print("KERNEL_OK")
</pallas_src>

<mosaic_0001>
module attributes {stable_mosaic.version = 11 : i64} {
  func.func @_patch_embed_kernel(%arg0: i32, %arg1: memref<16x192xf32, #tpu.memory_space<vmem>>, %arg2: memref<192x32xf32, #tpu.memory_space<vmem>>, %arg3: memref<1x32xf32, #tpu.memory_space<vmem>>, %arg4: memref<16x32xf32, #tpu.memory_space<vmem>>) attributes {dimension_semantics = [#tpu.dimension_semantics<parallel>], iteration_bounds = array<i64: 2>, scalar_prefetch = 0 : i64, scratch_operands = 0 : i64, tpu.core_type = #tpu.core_type<tc>, window_params = [{transform_indices = @transform_0, window_bounds = array<i64: 16, 192>}, {pipeline_mode = #tpu.pipeline_mode<synchronous>, transform_indices = @transform_1, window_bounds = array<i64: 192, 32>}, {pipeline_mode = #tpu.pipeline_mode<synchronous>, transform_indices = @transform_2, window_bounds = array<i64: 1, 32>}, {transform_indices = @transform_3, window_bounds = array<i64: 16, 32>}]} {
    %c0 = arith.constant 0 : index
    %c0_0 = arith.constant 0 : index
    %0 = vector.load %arg1[%c0, %c0_0] : memref<16x192xf32, #tpu.memory_space<vmem>>, vector<16x192xf32>
    %c0_1 = arith.constant 0 : index
    %c0_2 = arith.constant 0 : index
    %1 = vector.load %arg2[%c0_1, %c0_2] : memref<192x32xf32, #tpu.memory_space<vmem>>, vector<192x32xf32>
    %cst = arith.constant dense<0.000000e+00> : vector<16x32xf32>
    %2 = tpu.matmul %0, %1, %cst {dimension_numbers = #tpu.dot_dimension_numbers<[1], [0], [0], [1], [0, 0, 1, 1], [], []>} : vector<16x192xf32>, vector<192x32xf32>, vector<16x32xf32> -> vector<16x32xf32>
    %c0_3 = arith.constant 0 : index
    %c0_4 = arith.constant 0 : index
    %3 = vector.load %arg3[%c0_3, %c0_4] : memref<1x32xf32, #tpu.memory_space<vmem>>, vector<1x32xf32>
    %4 = vector.broadcast %3 : vector<1x32xf32> to vector<16x32xf32>
    %5 = arith.addf %2, %4 : vector<16x32xf32>
    %c0_5 = arith.constant 0 : index
    %c0_6 = arith.constant 0 : index
    %6 = vector.load %arg4[%c0_5, %c0_6] : memref<16x32xf32, #tpu.memory_space<vmem>>, vector<16x32xf32>
    tpu.vector_store %arg4[%c0_5, %c0_6], %5 {strides = array<i32>} : memref<16x32xf32, #tpu.memory_space<vmem>>, vector<16x32xf32>,
    return
  }
  func.func @transform_0(%arg0: i32) -> (i32, i32) {
    %c0_i32 = arith.constant 0 : i32
    %c0_i32_0 = arith.constant 0 : i32
    return %arg0, %c0_i32 : i32, i32
  }
  func.func @transform_1(%arg0: i32) -> (i32, i32) {
    %c0_i32 = arith.constant 0 : i32
    %c0_i32_0 = arith.constant 0 : i32
    %c0_i32_1 = arith.constant 0 : i32
    return %c0_i32, %c0_i32_0 : i32, i32
  }
  func.func @transform_2(%arg0: i32) -> (i32, i32) {
    %c0_i32 = arith.constant 0 : i32
    %c0_i32_0 = arith.constant 0 : i32
    %c0_i32_1 = arith.constant 0 : i32
    return %c0_i32, %c0_i32_0 : i32, i32
  }
  func.func @transform_3(%arg0: i32) -> (i32, i32) {
    %c0_i32 = arith.constant 0 : i32
    %c0_i32_0 = arith.constant 0 : i32
    return %arg0, %c0_i32 : i32, i32
  }
}

</mosaic_0001>

<bundles_post_ra>
// kernel: tpu_custom_call.1
= control target key start
LH: loop header
LB: loop body
LE: loop exit
PB: predicated region body
PF: predicated region fallthrough
CT: control target
= control target key end

     0   :  { %8 = vsyncpa [#allocation3], 0  ;;  %s786_s0 = inlined_call_operand.vmem [shape: f32[32,192], index: 0, kind: input, shape index: {}]   ;;  %s787_s1 = inlined_call_operand.vmem [shape: f32[192,32], index: 1, kind: input, shape index: {}]   ;;  %s788_s2 = inlined_call_operand.vmem [shape: f32[1,32], index: 2, kind: input, shape index: {}]   ;;  %s789_s3 = inlined_call_operand.hbm [shape: f32[32,32], index: 3, kind: output, shape index: {}]  }
   0x1   :  { %10 = vsyncpa [#allocation3 + $0x1], 0  ;;  %s579_s12 = smov 0   ;;  %s581_s13 = smov 0  }
   0x2   :  { %s583_s14 = smov 0   ;;  %s585_s15 = smov 0  }
   0x3 LB: > { %s600_s16 = sadd.s32 4294967295, %s553_s15   ;;  %s371_s17 = sadd.s32 4294967294, %s553_s15   ;;  %s553_s15 = sphi %s585_s15, %s795_s15   ;;  %s549_s14 = sphi %s583_s14, %s794_s14   ;;  %s545_s13 = sphi %s581_s13, %s793_s13   ;;  %s541_s12 = sphi %s579_s12, %s792_s12  }
   0x4   : > { %s604_s18 = sadd.s32 1, %s553_s15   ;;  %s91_s19 = sadd.s32 1, %s549_s14 }
   0x5   : > { %s88_s20 = ssub.s32 %s553_s15, %s604_s18  ;;  %p101_p0 = scmp.ne.s32.totalorder %s549_s14, %s545_s13 }
   0x6   : > { %p89_p1 = scmp.eq.s32.totalorder %s88_s20, 0  ;;  %p102_p2 = scmp.eq.s32.totalorder %s600_s16, 1 }
   0x7   : > { %p107_p3 = scmp.ne.s32.totalorder %s545_s13, %s541_s12  ;;  %p108_p4 = scmp.eq.s32.totalorder %s371_s17, 1 }
   0x8   : > { %s615_s21 = scalar_select %p89_p1, %s549_s14, %s91_s19  }
   0x9   : > { %p617_p5 = por %p102_p2, %p101_p0  ;;  %p621_p6 = por %p108_p4, %p107_p3 }
   0xa   : > { %p374_p7 = scmp.ge.s32.totalorder %s553_s15, 1  ;;  %p142_p8 = scmp.lt.s32.totalorder %s553_s15, 3 }
   0xc   : > { %p143_p9 = pnand %p374_p7, %p142_p8 }
   0xd   : > { %v179_v0 = vld [vmem:[%s787_s1] sm:$0xff] (!%p143_p9)  ;;  %v180_v1 = vld [vmem:[%s787_s1 + $0x8] sm:$0xff] (!%p143_p9)  ;;  %v181_v2 = vld [vmem:[%s787_s1 + $0x10] sm:$0xff] (!%p143_p9)  ;;  %s376_s30 = sshll.u32 (!%p143_p9), %s600_s16, 1  ;;  %v555_v3 = vmov (!%p143_p9), 0.0|0.0   ;;  %vm210_vm0 = vcmask (!%p143_p9), 523264  }
   0xe   : > { %146 = sbr.rel (%p143_p9) target bundleno = 292 (0x124), region = 32  ;;  %389 = vmatprep.subr.bf16.mxu0 (!%p143_p9), %v555_v3  ;;  %425 = vmatprep.subr.bf16.mxu1 (!%p143_p9), %v555_v3  ;;  %v390_v4 = vpack.c.bf16 (!%p143_p9), %v180_v1, %v179_v0  ;;  %v182_v5 = vld [vmem:[%s787_s1 + $0x18] sm:$0xff] (!%p143_p9)  ;;  %p168_p10 = scmp.lt.s32.totalorder (!%p143_p9), %s376_s30, 3  ;;  %v183_v7 = vld [vmem:[%s787_s1 + $0x20] sm:$0xff] (!%p143_p9)  ;;  %v184_v8 = vld [vmem:[%s787_s1 + $0x28] sm:$0xff] (!%p143_p9)  ;;  %vm292_vm1 = vcmask (!%p143_p9), 261120  }
   0xf   : > { %v393_v6 = vpack.c.bf16 (!%p143_p9), %v182_v5, %v181_v2  ;;  %v396_v9 = vpack.c.bf16 (!%p143_p9), %v184_v8, %v183_v7  ;;  %v185_v10 = vld [vmem:[%s787_s1 + $0x30] sm:$0xff] (!%p143_p9)  ;;  %v186_v11 = vld [vmem:[%s787_s1 + $0x38] sm:$0xff] (!%p143_p9)  ;;  %v187_v15 = vld [vmem:[%s787_s1 + $0x40] sm:$0xff] (!%p143_p9)  ;;  %s164_s25 = sand.u32 (!%p143_p9), 1, %s545_s13   ;;  %s388_s29 = sshll.u32 (!%p143_p9), %s600_s16, 8 }
  0x10   : > { %391 = vmatpush1.bf16.msra.mxu0 (!%p143_p9), %v390_v4  ;;  %437 = vmatpush1.bf16.msra.mxu1 (!%p143_p9), %v390_v4  ;;  %v399_v14 = vpack.c.bf16 (!%p143_p9), %v186_v11, %v185_v10  ;;  %v188_v16 = vld [vmem:[%s787_s1 + $0x48] sm:$0xff] (!%p143_p9)  ;;  %v189_v18 = vld [vmem:[%s787_s1 + $0x50] sm:$0xff] (!%p143_p9)  ;;  %v190_v19 = vld [vmem:[%s787_s1 + $0x58] sm:$0xff] (!%p143_p9)  ;;  %s375_s26 = sshll.u32 (!%p143_p9), %s164_s25, 4  ;;  %s743_s6 = scalar_lea.hbm (!%p143_p9), %s789_s3, %s388_s29 }
  0x11   : > { %392 = vmatprep.subr.bf16.mxu0 (!%p143_p9), %v555_v3  ;;  %426 = vmatprep.subr.bf16.mxu1 (!%p143_p9), %v555_v3  ;;  %v402_v17 = vpack.c.bf16 (!%p143_p9), %v188_v16, %v187_v15  ;;  %v405_v20 = vpack.c.bf16 (!%p143_p9), %v190_v19, %v189_v18  ;;  %v191_v21 = vld [vmem:[%s787_s1 + $0x60] sm:$0xff] (!%p143_p9)  ;;  %v192_v22 = vld [vmem:[%s787_s1 + $0x68] sm:$0xff] (!%p143_p9)  ;;  %v193_v24 = vld [vmem:[%s787_s1 + $0x70] sm:$0xff] (!%p143_p9)  ;;  %s166_s27 = scalar_lea.vmem (!%p143_p9), [#allocation2], %s375_s26  ;;  %s745_s16 = scalar_lea.sflag (!%p143_p9), [#allocation3], %s164_s25 }
  0x12   : > { %v408_v23 = vpack.c.bf16 (!%p143_p9), %v192_v22, %v191_v21  ;;  %v194_v25 = vld [vmem:[%s787_s1 + $0x78] sm:$0xff] (!%p143_p9)  ;;  %v195_v27 = vld [vmem:[%s787_s1 + $0x80] sm:$0xff] (!%p143_p9)  ;;  %v196_v28 = vld [vmem:[%s787_s1 + $0x88] sm:$0xff] (!%p143_p9)  ;;  %s309_s28 = sshll.u32 (!%p143_p9), %s166_s27, 4  ;;  %s556_s8 = smov (!%p143_p9), [#allocation2]   ;;  %s738_s28 = int_to_ptr.vmem [resolvable:$true] %s309_s28 }
  0x13   : > { %v411_v26 = vpack.c.bf16 (!%p143_p9), %v194_v25, %v193_v24  ;;  %v414_v29 = vpack.c.bf16 (!%p143_p9), %v196_v28, %v195_v27  ;;  %v197_v30 = vld [vmem:[%s787_s1 + $0x90] sm:$0xff] (!%p143_p9)  ;;  %v198_v31 = vld [vmem:[%s787_s1 + $0x98] sm:$0xff] (!%p143_p9)  ;;  %v199_v33 = vld [vmem:[%s787_s1 + $0xa0] sm:$0xff] (!%p143_p9)  ;;  %s491_s7 = scalar_lea.vmem (!%p143_p9), %s738_s28, 256  ;;  %s495_s9 = sshll.u32 (!%p143_p9), %s556_s8, 4  ;;  %s496_s9 = int_to_ptr.vmem [resolvable:$false] %s495_s9 }
  0x14   : > { %394 = vmatpush1.bf16.msra.mxu0 (!%p143_p9), %v393_v6  ;;  %438 = vmatpush1.bf16.msra.mxu1 (!%p143_p9), %v393_v6  ;;  %v417_v32 = vpack.c.bf16 (!%p143_p9), %v198_v31, %v197_v30  ;;  %v200_v34 = vld [vmem:[%s787_s1 + $0xa8] sm:$0xff] (!%p143_p9)  ;;  %v201_v36 = vld [vmem:[%s787_s1 + $0xb0] sm:$0xff] (!%p143_p9)  ;;  %v202_v37 = vld [vmem:[%s787_s1 + $0xb8] sm:$0xff] (!%p143_p9)  ;;  %p492_p11 = scmp.ne.s32.totalorder (!%p143_p9), %s738_s28, %s491_s7  ;;  %p498_p0 = scmp.lt.s32.totalorder (!%p143_p9), %s738_s28, %s496_s9 }
  0x15   : > { %s797_s30 = smov (!%p168_p10, %s376_s30), 3  ;;  %395 = vmatprep.subr.bf16.mxu0 %v555_v3  ;;  %427 = vmatprep.subr.bf16.mxu1 %v555_v3  ;;  %v420_v35 = vpack.c.bf16 %v200_v34, %v199_v33  ;;  %v423_v38 = vpack.c.bf16 %v202_v37, %v201_v36  ;;  %v379_v41 = vld [vmem:[%s788_s2] ss:$0 sm:$0xff] }
  0x16   : > { %s387_s10 = sshll.u32 %s797_s30, 4  ;;  %p493_p12 = pnand %p492_p11, %p617_p5 }
  0x17   : > { %s653_s19 = scalar_lea.vmem %s786_s0, %s387_s10  ;;  %s497_s10 = scalar_lea.vmem %s496_s9, 512 }
  0x18   : > { %v176_v12 = vld [vmem:[%s653_s19 + $0x8] sm:$0xff]  ;;  %v178_v13 = vld [vmem:[%s653_s19 + $0x18] sm:$0xff]  ;;  %397 = vmatpush1.bf16.msra.mxu0 %v396_v9  ;;  %439 = vmatpush1.bf16.msra.mxu1 %v396_v9  ;;  %v175_v39 = vld [vmem:[%s653_s19] sm:$0xff]  ;;  %p494_p13 = pneg %p493_p12  ;;  %p499_p1 = scmp.lt.s32.totalorder %s497_s10, %s491_s7 }
  0x19   : > { %380 = vmatprep.mubr.msk.f32.mxu0 %vm210_vm0, %v176_v12  ;;  %381 = vmatprep.mubr.msk.f32.mxu1 %vm210_vm0, %v178_v13  ;;  %v177_v40 = vld [vmem:[%s653_s19 + $0x10] sm:$0xff] }
  0x1a   : > { %398 = vmatprep.subr.bf16.mxu0 %v555_v3  ;;  %428 = vmatprep.subr.bf16.mxu1 %v555_v3  ;;  %p500_p2 = por %p499_p1, %p498_p0 }
  0x1c   : > { %400 = vmatpush1.bf16.msra.mxu0 %v399_v14  ;;  %440 = vmatpush1.bf16.msra.mxu1 %v399_v14  ;;  %p501_p3 = pnand %p500_p2, %p494_p13 }
  0x1d   : > { %401 = vmatprep.subr.bf16.mxu0 %v555_v3  ;;  %429 = vmatprep.subr.bf16.mxu1 %v555_v3 }
  0x20   : > { %403 = vmatpush1.bf16.msra.mxu0 %v402_v17  ;;  %441 = vmatpush1.bf16.msra.mxu1 %v402_v17 }
  0x21   : > { %404 = vmatprep.subr.bf16.mxu0 %v555_v3  ;;  %430 = vmatprep.subr.bf16.mxu1 %v555_v3 }
  0x24   : > { %406 = vmatpush1.bf16.msra.mxu0 %v405_v20  ;;  %442 = vmatpush1.bf16.msra.mxu1 %v405_v20 }
  0x25   : > { %407 = vmatprep.subr.bf16.mxu0 %v555_v3  ;;  %431 = vmatprep.subr.bf16.mxu1 %v555_v3 }
  0x28   : > { %409 = vmatpush1.bf16.msra.mxu0 %v408_v23  ;;  %443 = vmatpush1.bf16.msra.mxu1 %v408_v23 }
  0x29   : > { %410 = vmatprep.subr.bf16.mxu0 %v555_v3  ;;  %432 = vmatprep.subr.bf16.mxu1 %v555_v3 }
  0x2c   : > { %412 = vmatpush1.bf16.msra.mxu0 %v411_v26  ;;  %444 = vmatpush1.bf16.msra.mxu1 %v411_v26 }
  0x2d   : > { %413 = vmatprep.subr.bf16.mxu0 %v555_v3  ;;  %433 = vmatprep.subr.bf16.mxu1 %v555_v3 }
  0x30   : > { %415 = vmatpush1.bf16.msra.mxu0 %v414_v29  ;;  %445 = vmatpush1.bf16.msra.mxu1 %v414_v29 }
  0x31   : > { %416 = vmatprep.subr.bf16.mxu0 %v555_v3  ;;  %434 = vmatprep.subr.bf16.mxu1 %v555_v3 }
  0x34   : > { %418 = vmatpush1.bf16.msra.mxu0 %v417_v32  ;;  %446 = vmatpush1.bf16.msra.mxu1 %v417_v32 }
  0x35   : > { %419 = vmatprep.subr.bf16.mxu0 %v555_v3  ;;  %435 = vmatprep.subr.bf16.mxu1 %v555_v3 }
  0x38   : > { %421 = vmatpush1.bf16.msra.mxu0 %v420_v35  ;;  %447 = vmatpush1.bf16.msra.mxu1 %v420_v35 }
  0x39   : > { %422 = vmatprep.subr.bf16.mxu0 %v555_v3  ;;  %436 = vmatprep.subr.bf16.mxu1 %v555_v3 }
  0x3c   : > { %424 = vmatpush1.bf16.msra.mxu0 %v423_v38  ;;  %448 = vmatpush1.bf16.msra.mxu1 %v423_v38 }
  0x3f   : > { %282 = vmatmul.mubr.f32.vlgmr.msra.gmra.mrb[0].mxu0 %v175_v39  ;;  %287 = vmatmul.mubr.f32.vlgmr.msra.gmra.mrb[0].mxu1 %v177_v40 }
 0x112   : > { %v283_v42 = vpop.f32.mrb[0].mxu0  ;;  %v288_v43 = vpop.f32.mrb[0].mxu1 }
 0x113   : > { %v284_v44 = vadd.f32 %v379_v41, %v283_v42  ;;  %v289_v45 = vadd.f32 %v379_v41, %v288_v43  ;;  %v285_v46 = vpop.f32.mrb[1].mxu0  ;;  %v290_v47 = vpop.f32.mrb[1].mxu1 }
 0x115   : > { %293 = vst.msk [vmem:[%s166_s27] sm:$0xff] %vm292_vm1, %v284_v44  ;;  %294 = vst.msk [vmem:[%s166_s27 + $0x8] sm:$0xff] %vm292_vm1, %v289_v45 }
 0x116   : > { %504 = shalt.err (!%p501_p3)
}
 0x117   : > { %s505_s11 = scalar_lea.hbm %s743_s6, 256  ;;  %s509_s24 = scalar_lea.hbm %s789_s3, 512 }
 0x118   : > { %p506_p4 = scmp.ne.s32.totalorder %s743_s6, %s505_s11  ;;  %p510_p9 = scmp.lt.u32.totalorder %s743_s6, %s789_s3 }
 0x119   : > { %p511_p10 = scmp.lt.u32.totalorder %s509_s24, %s505_s11  ;;  %p513_p12 = scmp.lt.u32.totalorder %s505_s11, %s743_s6 }
 0x11a   : > { %p507_p7 = pnand %p506_p4, %p617_p5 }
 0x11b   : > { %p512_p11 = por %p511_p10, %p510_p9 }
 0x11c   : > { %p508_p8 = pneg %p507_p7 }
 0x11d   : > { %p514_p13 = por %p513_p12, %p512_p11 }
 0x11f   : > { %p515_p0 = pnand %p514_p13, %p508_p8 }
 0x121   : > { %518 = shalt.err (!%p515_p0)
}
 0x122   : > { %s557_s27 = smov 128   ;;  %s558_s29 = smov 8  }
 0x123   : > { %449 = dma.vmem_to_hbm [thread:$0]  (%p617_p5), %s738_s28, 256, %s743_s6, %s745_s16, %s557_s27, %s557_s27, %s558_s29  }
 0x124 PF: > { %p455_p1 = scmp.ge.s32.totalorder %s553_s15, 2  ;;  %s324_s30 = sand.u32 1, %s541_s12  }
 0x125   : > { %s325_s4 = scalar_lea.sflag [#allocation3], %s324_s30 }
 0x126   : > { %p452_p2 = pnand %p455_p1, %p621_p6 }
 0x128   : > { %536 = dma.done.wait (!%p452_p2), %s325_s4, 256  }
 0x129   : > { %538 = vsyncadd (!%p452_p2), %s325_s4, 4294967040  ;;  %p13_p3 = scmp.ge.s32.totalorder %s604_s18, 4   ;;  %s792_s12 = smov %s545_s13 }
 0x12a   : > { %s793_s13 = smov %s549_s14  ;;  %s794_s14 = smov %s615_s21 }
 0x12b   : > { %s795_s15 = smov %s604_s18  ;;  %15 = sbr.rel (!%p13_p3) target bundleno = 3 (0x3), region = 67 }
 0x132   :  { %330 = vsyncpa [#allocation3], 1 }
 0x133   :  { %332 = vsyncpa [#allocation3 + $0x1], 1 }

</bundles_post_ra>
